<compile_context>
chip_gen: v7x
topology: tpu7x:2x2x1
jax: 0.10.0
libtpu: 0.0.40
codegen_flags: <defaults>
</compile_context>

<pallas_src>
import functools
import math

import jax
import jax.numpy as jnp
from jax.experimental import pallas as pl
from jax.experimental.pallas import tpu as pltpu


def _roi_align_level_kernel(
    # scalar prefetch
    fetch_ref,       # SMEM (K,)   int32   feature-block (image) index per sorted roi
    # inputs
    rois_ref,        # SMEM (4K,)  float32 flat (x1, y1, x2, y2) per sorted roi
    mask_ref,        # SMEM (K,)   int32   1 iff roi is assigned to this level
    feat_ref,        # VMEM (1, 1, C_blk*H, W) one image's channel-tile slab (native dtype)
    # output
    out_ref,         # VMEM (1, 1, C_blk, P, P)
    *,
    spatial_scale: float,
    pooled: int,
    sampling_ratio: int,
    feat_h: int,
    feat_w: int,
    c_block: int,
):
    r = pl.program_id(1)          # roi index (innermost grid axis -> feature block reuse)
    P = pooled
    g = sampling_ratio
    f32 = jnp.float32

    @pl.when(mask_ref[r] == 0)
    def _():
        # Roi belongs to another level: write exact zeros (no arithmetic masking -> no NaN
        # propagation) and skip all sampling compute.
        out_ref[...] = jnp.zeros(out_ref.shape, out_ref.dtype)

    @pl.when(mask_ref[r] != 0)
    def _():
        x1 = rois_ref[4 * r + 0] * spatial_scale
        y1 = rois_ref[4 * r + 1] * spatial_scale
        x2 = rois_ref[4 * r + 2] * spatial_scale
        y2 = rois_ref[4 * r + 3] * spatial_scale

        # aligned=False semantics (torchvision default inside MultiScaleRoIAlign)
        roi_w = jnp.maximum(x2 - x1, 1.0)
        roi_h = jnp.maximum(y2 - y1, 1.0)
        bin_w = roi_w / P
        bin_h = roi_h / P

        def axis_weights(start, bin_size, size):
            # A[p, i] = (1/g) * sum_s bilinear_weight(sample s of output bin p, pixel i)
            p_i = jax.lax.broadcasted_iota(jnp.int32, (P, g, size), 0).astype(f32)
            s_i = jax.lax.broadcasted_iota(jnp.int32, (P, g, size), 1).astype(f32)
            idx = jax.lax.broadcasted_iota(jnp.int32, (P, g, size), 2).astype(f32)
            coord = start + p_i * bin_size + (s_i + 0.5) * bin_size / g
            valid = jnp.logical_and(coord >= -1.0, coord <= float(size))
            cc = jnp.maximum(coord, 0.0)
            lo = jnp.minimum(jnp.floor(cc), float(size - 1))
            hi = jnp.minimum(lo + 1.0, float(size - 1))
            lw = cc - lo
            hw = 1.0 - lw
            w = jnp.where(idx == lo, hw, 0.0) + jnp.where(idx == hi, lw, 0.0)
            w = jnp.where(valid, w, 0.0)
            return jnp.sum(w, axis=1) * (1.0 / g)          # (P, size), f32

        a_y = axis_weights(y1, bin_h, feat_h)              # (P, H)
        a_x = axis_weights(x1, bin_w, feat_w)              # (P, W)

        feat = feat_ref[0, 0]                              # (C_blk*H, W), native dtype
        # Contract W on the MXU:  (C_blk*H, W) x (P, W)^T -> (C_blk*H, P), f32 accumulation.
        t = jax.lax.dot_general(
            feat, a_x.astype(feat.dtype),
            (((1,), (1,)), ((), ())),
            preferred_element_type=f32)                    # (C_blk*H, P)
        t = t.reshape(c_block, feat_h, P)                  # leading-dim split only (cheap)

        # Contract H on the MXU, batched over the channel block:
        #   o[c, py, px] = sum_h a_y[py, h] * t[c, h, px]
        a_yb = jnp.broadcast_to(a_y[None], (c_block, P, feat_h))
        o = jnp.einsum('cph,chq->cpq', a_yb, t,
                       preferred_element_type=f32)         # (C_blk, P, P)

        out_ref[0, 0] = o.astype(out_ref.dtype)


def _roi_align_one_level(feat_r, rois_flat, mask, fetch, *,
                         spatial_scale, output_size, sampling_ratio,
                         feat_h, feat_w, c_block):
    n, ct, chb, w = feat_r.shape
    k = mask.shape[0]
    p = output_size

    kernel = functools.partial(
        _roi_align_level_kernel,
        spatial_scale=float(spatial_scale),
        pooled=p,
        sampling_ratio=sampling_ratio,
        feat_h=feat_h,
        feat_w=feat_w,
        c_block=c_block,
    )

    grid_spec = pltpu.PrefetchScalarGridSpec(
        num_scalar_prefetch=1,          # fetch (per-roi image index) -> SMEM, used by index_maps
        grid=(ct, k),                   # roi axis innermost -> resident feature block reuse
        in_specs=[
            pl.BlockSpec(memory_space=pltpu.MemorySpace.SMEM),    # rois_flat (4K,)
            pl.BlockSpec(memory_space=pltpu.MemorySpace.SMEM),    # mask      (K,)
            pl.BlockSpec((1, 1, chb, w), lambda ci, r, fetch: (fetch[r], ci, 0, 0)),
        ],
        out_specs=pl.BlockSpec((1, 1, c_block, p, p),
                               lambda ci, r, fetch: (r, ci, 0, 0, 0)),
    )

    itemsize = jnp.dtype(feat_r.dtype).itemsize
    feat_block_bytes = chb * w * itemsize
    out_block_bytes = c_block * p * p * itemsize
    vmem_limit = int(min(max(4 * (feat_block_bytes + out_block_bytes) + (1 << 20),
                             32 << 20), 64 << 20))

    return pl.pallas_call(
        kernel,
        grid_spec=grid_spec,
        out_shape=jax.ShapeDtypeStruct((k, ct, c_block, p, p), feat_r.dtype),
        compiler_params=pltpu.CompilerParams(
            dimension_semantics=("parallel", "parallel"),
            vmem_limit_bytes=vmem_limit),
    )(fetch, rois_flat, mask, feat_r)


class ListMultiScaleRoIAlign:
    """JAX/Pallas port of torchvision's MultiScaleRoIAlign wrapped by ListMultiScaleRoIAlign.

    No learnable parameters (the torch module has none)."""

    def __init__(self, featmap_names, output_size, sampling_ratio):
        self.featmap_names = list(featmap_names)
        if isinstance(output_size, (tuple, list)):
            assert output_size[0] == output_size[1]
            output_size = output_size[0]
        self.output_size = int(output_size)
        self.sampling_ratio = int(sampling_ratio)
        assert self.sampling_ratio > 0

    @staticmethod
    def _infer_scale(feat_hw, original_size):
        scales = []
        for s1, s2 in zip(feat_hw, original_size):
            approx = float(s1) / float(s2)
            scales.append(2.0 ** round(math.log2(approx)))
        assert scales[0] == scales[1]
        return scales[0]

    def __call__(self, features_list, proposals, image_shapes):
        # forward of ListMultiScaleRoIAlign: dict keyed by position
        features_dict = {i: x for i, x in enumerate(features_list)}
        x_filtered = [features_dict[kk] for kk in self.featmap_names]

        # setup_scales
        max_h = max(s[0] for s in image_shapes)
        max_w = max(s[1] for s in image_shapes)
        scales = [self._infer_scale(f.shape[-2:], (max_h, max_w)) for f in x_filtered]
        k_min = int(-math.log2(scales[0]))
        k_max = int(-math.log2(scales[-1]))

        # convert_to_roi_format
        rois = jnp.concatenate(proposals, axis=0).astype(jnp.float32)          # (K, 4)
        batch_idx = jnp.concatenate(
            [jnp.full((b.shape[0],), i, dtype=jnp.int32) for i, b in enumerate(proposals)],
            axis=0,
        )
        k = rois.shape[0]
        n_imgs = len(proposals)
        num_levels = len(x_filtered)

        # LevelMapper (canonical_scale=224, canonical_level=4, eps=1e-6)
        if num_levels == 1:
            levels = jnp.zeros((k,), dtype=jnp.int32)
        else:
            area = (rois[:, 2] - rois[:, 0]) * (rois[:, 3] - rois[:, 1])
            s = jnp.sqrt(area)
            target = jnp.floor(4.0 + jnp.log2(s / 224.0) + 1e-6)
            target = jnp.clip(target, k_min, k_max)
            levels = (target - k_min).astype(jnp.int32)                         # (K,)

        # Sort rois by (level, image) so consecutive grid steps keep the same feature
        # block resident (Pallas skips the DMA when the block index repeats).
        order = jnp.argsort(levels * jnp.int32(n_imgs) + batch_idx)
        inv_order = jnp.argsort(order)
        rois_s = rois[order]
        batch_s = batch_idx[order]
        levels_s = levels[order]
        rois_flat = rois_s.reshape(-1)                                          # (4K,)

        p = self.output_size
        c = x_filtered[0].shape[1]
        c_block = c if c <= 128 else (128 if c % 128 == 0 else c)
        ct = c // c_block

        result = None
        for lvl, (feat, scale) in enumerate(zip(x_filtered, scales)):
            n, c_, h, w = feat.shape
            # NCHW -> (N, C_tiles, C_blk*H, W): pure (free) reshape, no transpose.
            feat_r = feat.reshape(n, ct, c_block * h, w)

            in_level = (levels_s == lvl)
            mask = in_level.astype(jnp.int32)
            # Forward-fill the image index so rois from other levels reuse the block that is
            # already resident in VMEM (no extra DMA for masked rois).
            pos = jnp.where(in_level, jnp.arange(k, dtype=jnp.int32), -1)
            last = jax.lax.cummax(pos, axis=0)
            fetch = jnp.where(last >= 0, batch_s[jnp.maximum(last, 0)], 0).astype(jnp.int32)

            lvl_out = _roi_align_one_level(
                feat_r, rois_flat, mask, fetch,
                spatial_scale=scale,
                output_size=p,
                sampling_ratio=self.sampling_ratio,
                feat_h=h,
                feat_w=w,
                c_block=c_block,
            )
            result = lvl_out if result is None else result + lvl_out

        # (K, C_tiles, C_blk, P, P) -> (K, C, P, P) (torchvision output convention),
        # then undo the (level, image) sort.
        result = result.reshape(k, c, p, p)
        return result[inv_order]


if __name__ == "__main__":
    key = jax.random.PRNGKey(0)
    k1, k2, k3 = jax.random.split(key, 3)

    n, c = 2, 4
    image_shapes = [(64, 64), (64, 64)]
    # Two pyramid levels (NCHW, as a PyTorch model would produce them).
    feats = [
        jax.random.normal(k1, (n, c, 32, 32), dtype=jnp.float32),   # scale 0.5
        jax.random.normal(k2, (n, c, 16, 16), dtype=jnp.float32),   # scale 0.25
    ]

    # Proposals: 3 random boxes + 1 large box per image (exercises both levels).
    proposals = []
    per_image_keys = jax.random.split(k3, n)
    for i in range(n):
        ka, kb = jax.random.split(per_image_keys[i])
        xy = jax.random.uniform(ka, (3, 2), minval=0.0, maxval=20.0)
        wh = jax.random.uniform(kb, (3, 2), minval=4.0, maxval=40.0)
        boxes = jnp.concatenate([xy, xy + wh], axis=1)
        big = jnp.array([[1.0, 1.0, 63.0, 63.0]], dtype=jnp.float32)
        proposals.append(jnp.concatenate([boxes, big], axis=0).astype(jnp.float32))

    pooler = ListMultiScaleRoIAlign(featmap_names=[0, 1], output_size=7, sampling_ratio=2)
    out = pooler(feats, proposals, image_shapes)
    out = jax.block_until_ready(out)

    assert out.shape == (8, c, 7, 7), out.shape
    assert bool(jnp.all(jnp.isfinite(out)))
    print("KERNEL_OK")
</pallas_src>

<mosaic_0001>
module attributes {stable_mosaic.version = 11 : i64} {
  func.func @_roi_align_level_kernel(%arg0: i32, %arg1: i32, %arg2: memref<8xi32, #tpu.memory_space<smem>>, %arg3: memref<32xf32, #tpu.memory_space<smem>>, %arg4: memref<8xi32, #tpu.memory_space<smem>>, %arg5: memref<1x1x128x32xf32, #tpu.memory_space<vmem>>, %arg6: memref<1x1x4x7x7xf32, #tpu.memory_space<vmem>>) attributes {dimension_semantics = [#tpu.dimension_semantics<parallel>, #tpu.dimension_semantics<parallel>], iteration_bounds = array<i64: 1, 8>, scalar_prefetch = 1 : i64, scratch_operands = 0 : i64, tpu.core_type = #tpu.core_type<tc>, window_params = [{transform_indices = @transform_0, window_bounds = array<i64: 32>}, {transform_indices = @transform_1, window_bounds = array<i64: 8>}, {transform_indices = @transform_2, window_bounds = array<i64: 1, 1, 128, 32>}, {transform_indices = @transform_3, window_bounds = array<i64: 1, 1, 4, 7, 7>}]} {
    %0 = arith.index_cast %arg1 : i32 to index
    %1 = memref.load %arg4[%0] : memref<8xi32, #tpu.memory_space<smem>>
    %c0_i32 = arith.constant 0 : i32
    %2 = arith.cmpi eq, %1, %c0_i32 : i32
    %3 = arith.extui %2 : i1 to i32
    %c0_i32_0 = arith.constant 0 : i32
    %4 = arith.cmpi ne, %3, %c0_i32_0 : i32
    scf.if %4 {
      %cst = arith.constant 0.000000e+00 : f32
      %10 = vector.broadcast %cst : f32 to vector<1x1x4x7x7xf32>
      %c0 = arith.constant 0 : index
      %c0_3 = arith.constant 0 : index
      %c0_4 = arith.constant 0 : index
      %c0_5 = arith.constant 0 : index
      %c0_6 = arith.constant 0 : index
      %11 = vector.load %arg6[%c0, %c0_3, %c0_4, %c0_5, %c0_6] : memref<1x1x4x7x7xf32, #tpu.memory_space<vmem>>, vector<1x1x4x7x7xf32>
      tpu.vector_store %arg6[%c0, %c0_3, %c0_4, %c0_5, %c0_6], %10 {strides = array<i32>} : memref<1x1x4x7x7xf32, #tpu.memory_space<vmem>>, vector<1x1x4x7x7xf32>,
    } else {
    }
    %5 = arith.index_cast %arg1 : i32 to index
    %6 = memref.load %arg4[%5] : memref<8xi32, #tpu.memory_space<smem>>
    %c0_i32_1 = arith.constant 0 : i32
    %7 = arith.cmpi ne, %6, %c0_i32_1 : i32
    %8 = arith.extui %7 : i1 to i32
    %c0_i32_2 = arith.constant 0 : i32
    %9 = arith.cmpi ne, %8, %c0_i32_2 : i32
    scf.if %9 {
      %c4_i32 = arith.constant 4 : i32
      %10 = arith.muli %c4_i32, %arg1 : i32
      %c0_i32_3 = arith.constant 0 : i32
      %11 = arith.addi %10, %c0_i32_3 : i32
      %12 = arith.index_cast %11 : i32 to index
      %13 = memref.load %arg3[%12] : memref<32xf32, #tpu.memory_space<smem>>
      %cst = arith.constant 5.000000e-01 : f32
      %14 = arith.mulf %13, %cst : f32
      %c4_i32_4 = arith.constant 4 : i32
      %15 = arith.muli %c4_i32_4, %arg1 : i32
      %c1_i32 = arith.constant 1 : i32
      %16 = arith.addi %15, %c1_i32 : i32
      %17 = arith.index_cast %16 : i32 to index
      %18 = memref.load %arg3[%17] : memref<32xf32, #tpu.memory_space<smem>>
      %cst_5 = arith.constant 5.000000e-01 : f32
      %19 = arith.mulf %18, %cst_5 : f32
      %c4_i32_6 = arith.constant 4 : i32
      %20 = arith.muli %c4_i32_6, %arg1 : i32
      %c2_i32 = arith.constant 2 : i32
      %21 = arith.addi %20, %c2_i32 : i32
      %22 = arith.index_cast %21 : i32 to index
      %23 = memref.load %arg3[%22] : memref<32xf32, #tpu.memory_space<smem>>
      %cst_7 = arith.constant 5.000000e-01 : f32
      %24 = arith.mulf %23, %cst_7 : f32
      %c4_i32_8 = arith.constant 4 : i32
      %25 = arith.muli %c4_i32_8, %arg1 : i32
      %c3_i32 = arith.constant 3 : i32
      %26 = arith.addi %25, %c3_i32 : i32
      %27 = arith.index_cast %26 : i32 to index
      %28 = memref.load %arg3[%27] : memref<32xf32, #tpu.memory_space<smem>>
      %cst_9 = arith.constant 5.000000e-01 : f32
      %29 = arith.mulf %28, %cst_9 : f32
      %30 = arith.subf %24, %14 : f32
      %cst_10 = arith.constant 1.000000e+00 : f32
      %31 = arith.maximumf %30, %cst_10 : f32
      %32 = arith.subf %29, %19 : f32
      %cst_11 = arith.constant 1.000000e+00 : f32
      %33 = arith.maximumf %32, %cst_11 : f32
      %cst_12 = arith.constant 7.000000e+00 : f32
      %34 = arith.divf %31, %cst_12 : f32
      %cst_13 = arith.constant 7.000000e+00 : f32
      %35 = arith.divf %33, %cst_13 : f32
      %36 = tpu.iota {dimensions = array<i32: 0>} : vector<7x2x32xi32>
      %37 = arith.sitofp %36 : vector<7x2x32xi32> to vector<7x2x32xf32>
      %38 = tpu.iota {dimensions = array<i32: 1>} : vector<7x2x32xi32>
      %39 = arith.sitofp %38 : vector<7x2x32xi32> to vector<7x2x32xf32>
      %40 = tpu.iota {dimensions = array<i32: 2>} : vector<7x2x32xi32>
      %41 = arith.sitofp %40 : vector<7x2x32xi32> to vector<7x2x32xf32>
      %42 = vector.broadcast %35 : f32 to vector<7x2x32xf32>
      %43 = arith.mulf %37, %42 : vector<7x2x32xf32>
      %44 = vector.broadcast %19 : f32 to vector<7x2x32xf32>
      %45 = arith.addf %44, %43 : vector<7x2x32xf32>
      %cst_14 = arith.constant 5.000000e-01 : f32
      %46 = vector.broadcast %cst_14 : f32 to vector<7x2x32xf32>
      %47 = arith.addf %39, %46 : vector<7x2x32xf32>
      %48 = vector.broadcast %35 : f32 to vector<7x2x32xf32>
      %49 = arith.mulf %47, %48 : vector<7x2x32xf32>
      %cst_15 = arith.constant 2.000000e+00 : f32
      %50 = vector.broadcast %cst_15 : f32 to vector<7x2x32xf32>
      %51 = arith.divf %49, %50 : vector<7x2x32xf32>
      %52 = arith.addf %45, %51 : vector<7x2x32xf32>
      %cst_16 = arith.constant -1.000000e+00 : f32
      %53 = vector.broadcast %cst_16 : f32 to vector<7x2x32xf32>
      %54 = arith.cmpf oge, %52, %53 : vector<7x2x32xf32>
      %cst_17 = arith.constant 3.200000e+01 : f32
      %55 = vector.broadcast %cst_17 : f32 to vector<7x2x32xf32>
      %56 = arith.cmpf ole, %52, %55 : vector<7x2x32xf32>
      %57 = arith.andi %54, %56 : vector<7x2x32xi1>
      %cst_18 = arith.constant 0.000000e+00 : f32
      %58 = vector.broadcast %cst_18 : f32 to vector<7x2x32xf32>
      %59 = arith.maximumf %52, %58 : vector<7x2x32xf32>
      %60 = math.floor %59 : vector<7x2x32xf32>
      %cst_19 = arith.constant 3.100000e+01 : f32
      %61 = vector.broadcast %cst_19 : f32 to vector<7x2x32xf32>
      %62 = arith.minimumf %60, %61 : vector<7x2x32xf32>
      %cst_20 = arith.constant 1.000000e+00 : f32
      %63 = vector.broadcast %cst_20 : f32 to vector<7x2x32xf32>
      %64 = arith.addf %62, %63 : vector<7x2x32xf32>
      %cst_21 = arith.constant 3.100000e+01 : f32
      %65 = vector.broadcast %cst_21 : f32 to vector<7x2x32xf32>
      %66 = arith.minimumf %64, %65 : vector<7x2x32xf32>
      %67 = arith.subf %59, %62 : vector<7x2x32xf32>
      %cst_22 = arith.constant 1.000000e+00 : f32
      %68 = vector.broadcast %cst_22 : f32 to vector<7x2x32xf32>
      %69 = arith.subf %68, %67 : vector<7x2x32xf32>
      %70 = arith.cmpf oeq, %41, %62 : vector<7x2x32xf32>
      %cst_23 = arith.constant 0.000000e+00 : f32
      %71 = vector.broadcast %cst_23 : f32 to vector<7x2x32xf32>
      %72 = arith.select %70, %69, %71 : vector<7x2x32xi1>, vector<7x2x32xf32>
      %73 = arith.cmpf oeq, %41, %66 : vector<7x2x32xf32>
      %cst_24 = arith.constant 0.000000e+00 : f32
      %74 = vector.broadcast %cst_24 : f32 to vector<7x2x32xf32>
      %75 = arith.select %73, %67, %74 : vector<7x2x32xi1>, vector<7x2x32xf32>
      %76 = arith.addf %72, %75 : vector<7x2x32xf32>
      %cst_25 = arith.constant 0.000000e+00 : f32
      %77 = vector.broadcast %cst_25 : f32 to vector<7x2x32xf32>
      %78 = arith.select %57, %76, %77 : vector<7x2x32xi1>, vector<7x2x32xf32>
      %cst_26 = arith.constant dense<0.000000e+00> : vector<7x32xf32>
      %79 = vector.multi_reduction <add>, %78, %cst_26 [1] : vector<7x2x32xf32> to vector<7x32xf32>
      %cst_27 = arith.constant 5.000000e-01 : f32
      %80 = vector.broadcast %cst_27 : f32 to vector<7x32xf32>
      %81 = arith.mulf %79, %80 : vector<7x32xf32>
      %82 = tpu.iota {dimensions = array<i32: 0>} : vector<7x2x32xi32>
      %83 = arith.sitofp %82 : vector<7x2x32xi32> to vector<7x2x32xf32>
      %84 = tpu.iota {dimensions = array<i32: 1>} : vector<7x2x32xi32>
      %85 = arith.sitofp %84 : vector<7x2x32xi32> to vector<7x2x32xf32>
      %86 = tpu.iota {dimensions = array<i32: 2>} : vector<7x2x32xi32>
      %87 = arith.sitofp %86 : vector<7x2x32xi32> to vector<7x2x32xf32>
      %88 = vector.broadcast %34 : f32 to vector<7x2x32xf32>
      %89 = arith.mulf %83, %88 : vector<7x2x32xf32>
      %90 = vector.broadcast %14 : f32 to vector<7x2x32xf32>
      %91 = arith.addf %90, %89 : vector<7x2x32xf32>
      %cst_28 = arith.constant 5.000000e-01 : f32
      %92 = vector.broadcast %cst_28 : f32 to vector<7x2x32xf32>
      %93 = arith.addf %85, %92 : vector<7x2x32xf32>
      %94 = vector.broadcast %34 : f32 to vector<7x2x32xf32>
      %95 = arith.mulf %93, %94 : vector<7x2x32xf32>
      %cst_29 = arith.constant 2.000000e+00 : f32
      %96 = vector.broadcast %cst_29 : f32 to vector<7x2x32xf32>
      %97 = arith.divf %95, %96 : vector<7x2x32xf32>
      %98 = arith.addf %91, %97 : vector<7x2x32xf32>
      %cst_30 = arith.constant -1.000000e+00 : f32
      %99 = vector.broadcast %cst_30 : f32 to vector<7x2x32xf32>
      %100 = arith.cmpf oge, %98, %99 : vector<7x2x32xf32>
      %cst_31 = arith.constant 3.200000e+01 : f32
      %101 = vector.broadcast %cst_31 : f32 to vector<7x2x32xf32>
      %102 = arith.cmpf ole, %98, %101 : vector<7x2x32xf32>
      %103 = arith.andi %100, %102 : vector<7x2x32xi1>
      %cst_32 = arith.constant 0.000000e+00 : f32
      %104 = vector.broadcast %cst_32 : f32 to vector<7x2x32xf32>
      %105 = arith.maximumf %98, %104 : vector<7x2x32xf32>
      %106 = math.floor %105 : vector<7x2x32xf32>
      %cst_33 = arith.constant 3.100000e+01 : f32
      %107 = vector.broadcast %cst_33 : f32 to vector<7x2x32xf32>
      %108 = arith.minimumf %106, %107 : vector<7x2x32xf32>
      %cst_34 = arith.constant 1.000000e+00 : f32
      %109 = vector.broadcast %cst_34 : f32 to vector<7x2x32xf32>
      %110 = arith.addf %108, %109 : vector<7x2x32xf32>
      %cst_35 = arith.constant 3.100000e+01 : f32
      %111 = vector.broadcast %cst_35 : f32 to vector<7x2x32xf32>
      %112 = arith.minimumf %110, %111 : vector<7x2x32xf32>
      %113 = arith.subf %105, %108 : vector<7x2x32xf32>
      %cst_36 = arith.constant 1.000000e+00 : f32
      %114 = vector.broadcast %cst_36 : f32 to vector<7x2x32xf32>
      %115 = arith.subf %114, %113 : vector<7x2x32xf32>
      %116 = arith.cmpf oeq, %87, %108 : vector<7x2x32xf32>
      %cst_37 = arith.constant 0.000000e+00 : f32
      %117 = vector.broadcast %cst_37 : f32 to vector<7x2x32xf32>
      %118 = arith.select %116, %115, %117 : vector<7x2x32xi1>, vector<7x2x32xf32>
      %119 = arith.cmpf oeq, %87, %112 : vector<7x2x32xf32>
      %cst_38 = arith.constant 0.000000e+00 : f32
      %120 = vector.broadcast %cst_38 : f32 to vector<7x2x32xf32>
      %121 = arith.select %119, %113, %120 : vector<7x2x32xi1>, vector<7x2x32xf32>
      %122 = arith.addf %118, %121 : vector<7x2x32xf32>
      %cst_39 = arith.constant 0.000000e+00 : f32
      %123 = vector.broadcast %cst_39 : f32 to vector<7x2x32xf32>
      %124 = arith.select %103, %122, %123 : vector<7x2x32xi1>, vector<7x2x32xf32>
      %cst_40 = arith.constant dense<0.000000e+00> : vector<7x32xf32>
      %125 = vector.multi_reduction <add>, %124, %cst_40 [1] : vector<7x2x32xf32> to vector<7x32xf32>
      %cst_41 = arith.constant 5.000000e-01 : f32
      %126 = vector.broadcast %cst_41 : f32 to vector<7x32xf32>
      %127 = arith.mulf %125, %126 : vector<7x32xf32>
      %c0 = arith.constant 0 : index
      %c0_42 = arith.constant 0 : index
      %c0_43 = arith.constant 0 : index
      %c0_44 = arith.constant 0 : index
      %128 = vector.load %arg5[%c0, %c0_42, %c0_43, %c0_44] : memref<1x1x128x32xf32, #tpu.memory_space<vmem>>, vector<1x1x128x32xf32>
      %129 = vector.shape_cast %128 : vector<1x1x128x32xf32> to vector<128x32xf32>
      %cst_45 = arith.constant dense<0.000000e+00> : vector<128x7xf32>
      %130 = tpu.matmul %129, %127, %cst_45 {dimension_numbers = #tpu.dot_dimension_numbers<[1], [1], [0], [0], [0, 0, 1, 0], [], []>} : vector<128x32xf32>, vector<7x32xf32>, vector<128x7xf32> -> vector<128x7xf32>
      %131 = vector.shape_cast %130 : vector<128x7xf32> to vector<4x32x7xf32>
      %132 = vector.shape_cast %81 : vector<7x32xf32> to vector<1x7x32xf32>
      %133 = vector.shape_cast %132 : vector<1x7x32xf32> to vector<1x7x32xf32>
      %134 = vector.broadcast %133 : vector<1x7x32xf32> to vector<4x7x32xf32>
      "tpu.trace_start"() <{level = 10 : i32, message = "cph,chq->cpq"}> : () -> ()
      %cst_46 = arith.constant dense<0.000000e+00> : vector<4x7x7xf32>
      %135 = tpu.matmul %134, %131, %cst_46 {dimension_numbers = #tpu.dot_dimension_numbers<[2], [1], [1], [2], [0, 0, 0, 1, 1, 2], [0], [0]>} : vector<4x7x32xf32>, vector<4x32x7xf32>, vector<4x7x7xf32> -> vector<4x7x7xf32>
      "tpu.trace_stop"() : () -> ()
      %c0_47 = arith.constant 0 : index
      %c0_48 = arith.constant 0 : index
      %c0_49 = arith.constant 0 : index
      %c0_50 = arith.constant 0 : index
      %c0_51 = arith.constant 0 : index
      %136 = vector.load %arg6[%c0_47, %c0_48, %c0_49, %c0_50, %c0_51] : memref<1x1x4x7x7xf32, #tpu.memory_space<vmem>>, vector<1x1x4x7x7xf32>
      %137 = vector.shape_cast %136 : vector<1x1x4x7x7xf32> to vector<4x7x7xf32>
      %138 = vector.shape_cast %135 : vector<4x7x7xf32> to vector<1x1x4x7x7xf32>
      tpu.vector_store %arg6[%c0_47, %c0_48, %c0_49, %c0_50, %c0_51], %138 {strides = array<i32>} : memref<1x1x4x7x7xf32, #tpu.memory_space<vmem>>, vector<1x1x4x7x7xf32>,
    } else {
    }
    return
  }
  func.func @transform_0(%arg0: i32, %arg1: i32, %arg2: memref<8xi32, #tpu.memory_space<smem>>) -> i32 {
    %c0_i32 = arith.constant 0 : i32
    %c0_i32_0 = arith.constant 0 : i32
    return %c0_i32 : i32
  }
  func.func @transform_1(%arg0: i32, %arg1: i32, %arg2: memref<8xi32, #tpu.memory_space<smem>>) -> i32 {
    %c0_i32 = arith.constant 0 : i32
    %c0_i32_0 = arith.constant 0 : i32
    return %c0_i32 : i32
  }
  func.func @transform_2(%arg0: i32, %arg1: i32, %arg2: memref<8xi32, #tpu.memory_space<smem>>) -> (i32, i32, i32, i32) {
    %0 = arith.index_cast %arg1 : i32 to index
    %1 = memref.load %arg2[%0] : memref<8xi32, #tpu.memory_space<smem>>
    %c0_i32 = arith.constant 0 : i32
    %c0_i32_0 = arith.constant 0 : i32
    %c0_i32_1 = arith.constant 0 : i32
    return %1, %arg0, %c0_i32, %c0_i32_0 : i32, i32, i32, i32
  }
  func.func @transform_3(%arg0: i32, %arg1: i32, %arg2: memref<8xi32, #tpu.memory_space<smem>>) -> (i32, i32, i32, i32, i32) {
    %c0_i32 = arith.constant 0 : i32
    %c0_i32_0 = arith.constant 0 : i32
    %c0_i32_1 = arith.constant 0 : i32
    %c0_i32_2 = arith.constant 0 : i32
    return %arg1, %arg0, %c0_i32, %c0_i32_0, %c0_i32_1 : i32, i32, i32, i32, i32
  }
}

</mosaic_0001>

<bundles_post_ra>
// kernel: tpu_custom_call.1
= control target key start
LH: loop header
LB: loop body
LE: loop exit
PB: predicated region body
PF: predicated region fallthrough
CT: control target
= control target key end

     0   :  { %s2182_s0 = inlined_call_operand.vmem [shape: s32[8], index: 0, kind: input, shape index: {}]   ;;  %s2183_s1 = inlined_call_operand.vmem [shape: f32[32], index: 1, kind: input, shape index: {}]   ;;  %s2184_s2 = inlined_call_operand.vmem [shape: s32[8], index: 2, kind: input, shape index: {}]   ;;  %s2185_s3 = inlined_call_operand.vmem [shape: f32[2,1,128,32], index: 3, kind: input, shape index: {}]   ;;  %s2186_s4 = inlined_call_operand.vmem [shape: f32[8,1,4,7,7], index: 4, kind: output, shape index: {}]  }
   0x1   :  { %s9_s17 = sshll.u32 %s2182_s0, 4  ;;  %s10_s17 = int_to_ptr.vmem [resolvable:$true] %s9_s17 }
   0x2   :  { %s1556_s18 = scalar_lea.vmem %s10_s17, 16  ;;  %p1561_p1 = scmp.lt.s32.totalorder %s10_s17, %s10_s17 }
   0x3   :  { %p1557_p0 = scmp.ne.s32.totalorder %s10_s17, %s1556_s18  ;;  %p1562_p2 = scmp.lt.s32.totalorder %s1556_s18, %s1556_s18 }
   0x5   :  { %p1563_p3 = por %p1562_p2, %p1561_p1 }
   0x7   :  { %p1564_p4 = pnand %p1563_p3, %p1557_p0 }
   0x9   :  { %1567 = shalt.err (!%p1564_p4)  }
   0xa   :  { %s1632_s19 = smov [#allocation3]  }
   0xb   :  { %12 = dma.vmem_to_smem %s10_s17, 16, %s1632_s19, [#allocation2] }
   0xc   :  { %1610 = dma.done.wait [#allocation2], 16 }
   0xd   :  { %1611 = vsyncadd [#allocation2], 4294967280 }
   0xe   :  { %14 = sfence }
   0xf   :  { %15 = vsyncpa [#allocation5], 0 }
  0x10   :  { %16 = vsyncpa [#allocation7], 0  ;;  %s1668_s20 = smov 0   ;;  %s1670_s21 = smov 0  }
  0x11   :  { %s1672_s0 = smov 0  }
  0x12 LB: > { %s1333_s22 = sadd.s32 4294967295, %s1630_s0   ;;  %s31_s23 = sadd.s32 1, %s1626_s21  ;;  %s1630_s0 = sphi %s1672_s0, %s22_s0   ;;  %s1626_s21 = sphi %s1670_s21, %s2303_s21   ;;  %s1622_s20 = sphi %s1668_s20, %s2302_s20  }
  0x13   : > { %p32_p5 = scmp.ge.s32.totalorder %s31_s23, 8  ;;  %p1335_p6 = scmp.ge.s32.totalorder %s1630_s0, 1 }
  0x14   : > { %p139_p7 = scmp.lt.s32.totalorder %s1630_s0, 9  ;;  %p1693_p9 = scmp.eq.s32.totalorder %s1333_s22, 0 }
  0x15   : > { %s2305_s23 = smov (%p32_p5, %s31_s23), 0  ;;  %s152_s28 = sshll.u32 %s2183_s1, 4  ;;  %s153_s28 = int_to_ptr.vmem [resolvable:$true] %s152_s28 }
  0x16   : > { %p1689_p8 = pnand %p1335_p6, %p139_p7  ;;  %s163_s5 = sshll.u32 %s2184_s2, 4  ;;  %s164_s5 = int_to_ptr.vmem [resolvable:$true] %s163_s5 }
  0x17   : > { %s2197_s25 = scalar_select %p1693_p9, 1, 0 }
  0x18   : > { %s2196_s24 = scalar_select %p1689_p8, 1, 0 }
  0x19   : > { %p1513_p10 = pneg %p1689_p8  ;;  %s1568_s7 = scalar_lea.vmem %s153_s28, 16 }
  0x1a   : > { %p1569_p12 = scmp.ne.s32.totalorder %s153_s28, %s1568_s7  ;;  %p1576_p2 = scmp.lt.s32.totalorder %s153_s28, %s153_s28 }
  0x1b   : > { %p1707_p11 = pnand %p1693_p9, %p1513_p10  ;;  %p1577_p3 = scmp.lt.s32.totalorder %s1568_s7, %s1568_s7 }
  0x1d   : > { %p1570_p13 = pneg %p1707_p11  ;;  %p1578_p4 = por %p1577_p3, %p1576_p2 }
  0x1f   : > { %p1571_p0 = pnand %p1570_p13, %p1569_p12 }
  0x21   : > { %p1572_p1 = pneg %p1571_p0 }
  0x23   : > { %p1579_p5 = pnand %p1578_p4, %p1572_p1 }
  0x25   : > { %1582 = shalt.err (!%p1579_p5)
}
  0x26   : > { %s1633_s8 = smov [#allocation4]   ;;  %s1583_s9 = scalar_lea.vmem %s164_s5, 16 }
  0x27   : > { %1516 = dma.vmem_to_smem (!%p1707_p11), %s153_s28, 16, %s1633_s8, [#allocation5]  }
  0x28   : > { %p1584_p6 = scmp.ne.s32.totalorder %s164_s5, %s1583_s9  ;;  %p1591_p9 = scmp.lt.s32.totalorder %s164_s5, %s164_s5 }
  0x29   : > { %p1592_p8 = scmp.lt.s32.totalorder %s1583_s9, %s1583_s9 }
  0x2a   : > { %p1586_p7 = pnand %p1584_p6, %p1570_p13 }
  0x2b   : > { %p1593_p12 = por %p1592_p8, %p1591_p9 }
  0x2c   : > { %p1587_p10 = pneg %p1586_p7 }
  0x2e   : > { %p1594_p0 = pnand %p1593_p12, %p1587_p10 }
  0x30   : > { %1597 = shalt.err (!%p1594_p0)
}
  0x31   : > { %s1634_s10 = smov [#allocation6]   ;;  %p2199_p1 = scmp.ne.s32.totalorder %s2196_s24, 0 }
  0x32   : > { %1519 = dma.vmem_to_smem (!%p1707_p11), %s164_s5, 16, %s1634_s10, [#allocation7]  }
  0x33   : > { %190 = sbr.rel (%p2199_p1) target bundleno = 621 (0x26d), region = 32  ;;  %p2200_p2 = scmp.ne.s32.totalorder (!%p2199_p1), %s2197_s25, 0 }
  0x3a   : > { %1613 = dma.done.wait (%p2200_p2), [#allocation5], 16  }
  0x3b   : > { %1615 = vsyncadd (%p2200_p2), [#allocation5], 4294967280 }
  0x3c   : > { %1617 = dma.done.wait (%p2200_p2), [#allocation7], 16  }
  0x3d   : > { %1619 = vsyncadd (%p2200_p2), [#allocation7], 4294967280 }
  0x3e   : > { %200 = sfence }
  0x3f   : > { %s228_s11 = sld [smem:[#allocation3 + %s1622_s20]]  ;;  %p239_p8 = scmp.lt.s32.totalorder %s1622_s20, 7 }
  0x40   : > { %s248_s12 = sld [smem:[#allocation6 + %s1622_s20]] }
  0x41   : > { %s240_s13 = scalar_select %p239_p8, %s1622_s20, 7 }
  0x43   : > { %s1373_s14 = sshll.u32 %s240_s13, 5 }
  0x44   : > { %s1734_s17 = scalar_lea.vmem %s2186_s4, %s1373_s14 }
  0x45   : > { %p229_p9 = scmp.lt.s32.totalorder %s228_s11, 1 }
  0x46   : > { %p1346_p11 = scmp.ne.s32.totalorder %s248_s12, 0 }
  0x47   : > { %s2307_s11 = smov (!%p229_p9, %s228_s11), 1  ;;  %vm253_vm0 = vcmask (!%p1346_p11), 55296   ;;  %v1635_v0 = vmov (!%p1346_p11), 0.0  }
  0x48   : > { %s1372_s18 = sshll.u32 %s2307_s11, 7  ;;  %252 = sbr.rel (%p1346_p11) target bundleno = 79 (0x4f), region = 44  ;;  %254 = vst.msk [vmem:[%s1734_s17] sm:$0x7f] (!%p1346_p11), %vm253_vm0, %v1635_v0  ;;  %255 = vst.msk [vmem:[%s1734_s17 + $0x8] sm:$0x7f] (!%p1346_p11), %vm253_vm0, %v1635_v0 }
  0x49   : > { %s1739_s24 = scalar_lea.vmem %s2185_s3, %s1372_s18  ;;  %256 = vst.msk [vmem:[%s1734_s17 + $0x10] sm:$0x7f] (!%p1346_p11), %vm253_vm0, %v1635_v0  ;;  %257 = vst.msk [vmem:[%s1734_s17 + $0x18] sm:$0x7f] (!%p1346_p11), %vm253_vm0, %v1635_v0 }
  0x4f PF: > { %s258_s25 = sld [smem:[#allocation6 + %s1622_s20]] }
  0x55   : > { %p1347_p13 = scmp.eq.s32.totalorder %s258_s25, 0 }
  0x56   : > { %s1747_s26 = sshll.u32 (!%p1347_p13), %s1622_s20, 2  ;;  %v687_v1 = vld [vmem:[%s1739_s24] sm:$0xff] (!%p1347_p13)  ;;  %v292_v2 = vlaneseq (!%p1347_p13)  ;;  %vm2190_vm1 = vcmask (!%p1347_p13), 261120   ;;  %s1636_s7 = smov (!%p1347_p13), 1.0  }
  0x57   : > { %262 = sbr.rel (%p1347_p13) target bundleno = 621 (0x26d), region = 48  ;;  %s264_s27 = sld [smem:[#allocation4 + %s1747_s26]] (!%p1347_p13)  ;;  %1413 = vmatprep.mubr.msk.f32.mxu0 (!%p1347_p13), %vm2190_vm1, %v687_v1 }
  0x58   : > { %s269_s28 = sadd.s32 (!%p1347_p13), 2, %s1747_s26  ;;  %v293_v3 = vshrl.u32 (!%p1347_p13), %v292_v2, 7  ;;  %v296_v29 = vand.u32 (!%p1347_p13), 127, %v292_v2  ;;  %s266_s9 = sadd.s32 (!%p1347_p13), 1, %s1747_s26 }
  0x59   : > { %s270_s29 = sld [smem:[#allocation4 + %s269_s28]] (!%p1347_p13)  ;;  %s272_s10 = sadd.s32 (!%p1347_p13), 3, %s1747_s26 }
  0x5a   : > { %v294_v4 = vcvt.s32.f32 (!%p1347_p13), %v293_v3  ;;  %v1777_v37 = vcvt.s32.f32 (!%p1347_p13), %v296_v29  ;;  %s267_s11 = sld [smem:[#allocation4 + %s266_s9]] (!%p1347_p13) }
  0x5b   : > { %s273_s12 = sld [smem:[#allocation4 + %s272_s10]] (!%p1347_p13) }
  0x5c   : > { %v1754_v5 = vadd.f32 (!%p1347_p13), 0.5, %v294_v4 }
  0x5d   : > { %s265_s30 = smul.f32 (!%p1347_p13), 0.5, %s264_s27 }
  0x5f   : > { %s271_s5 = smul.f32 0.5, %s270_s29  ;;  %v502_v7 = vstv %s265_s30 }
  0x60   : > { %s268_s13 = smul.f32 0.5, %s267_s11 }
  0x61   : > { %s275_s6 = ssub.f32 %s271_s5, %s265_s30  ;;  %s274_s14 = smul.f32 0.5, %s273_s12 }
  0x63   : > { %s276_s8 = smax.f32 %s1636_s7, %s275_s6  ;;  %s277_s15 = ssub.f32 %s274_s14, %s268_s13 }
  0x64   : > { %s281_s20 = smul.f32 0.14285715, %s276_s8 }
  0x65   : > { %s278_s16 = smax.f32 %s1636_s7, %s277_s15 }
  0x66   : > { %v494_v6 = vstv %s281_s20  ;;  %s284_s18 = smul.f32 0.14285715, %s278_s16 }
  0x67   : > { %v495_v8 = vmul.f32 0.0, %v494_v6  ;;  %v497_v9 = vmul.f32 2.0, %v494_v6  ;;  %v498_v10 = vmul.f32 3.0, %v494_v6  ;;  %v499_v11 = vmul.f32 4.0, %v494_v6 }
  0x68   : > { %v500_v12 = vmul.f32 5.0, %v494_v6  ;;  %v501_v13 = vmul.f32 6.0, %v494_v6  ;;  %v510_v14 = vmul.f32 %v494_v6, %v1754_v5  ;;  %v504_v16 = vadd.f32 %v502_v7, %v494_v6 }
  0x69   : > { %v503_v15 = vadd.f32 %v502_v7, %v495_v8  ;;  %v505_v17 = vadd.f32 %v502_v7, %v497_v9  ;;  %v506_v18 = vadd.f32 %v502_v7, %v498_v10  ;;  %v507_v19 = vadd.f32 %v502_v7, %v499_v11 }
  0x6a   : > { %v508_v20 = vadd.f32 %v502_v7, %v500_v12  ;;  %v511_v21 = vmul.f32 0.5, %v510_v14  ;;  %v509_v22 = vadd.f32 %v502_v7, %v501_v13 }
  0x6c   : > { %v1757_v23 = vadd.f32 %v511_v21, %v503_v15  ;;  %v1759_v24 = vadd.f32 %v511_v21, %v504_v16  ;;  %v1761_v25 = vadd.f32 %v511_v21, %v505_v17  ;;  %v1763_v26 = vadd.f32 %v511_v21, %v506_v18 }
  0x6d   : > { %v1765_v27 = vadd.f32 %v511_v21, %v507_v19  ;;  %v1767_v28 = vadd.f32 %v511_v21, %v508_v20  ;;  %v1769_v30 = vadd.f32 %v511_v21, %v509_v22 }
  0x6e   : > { %v540_v31 = vmax.f32 %v1757_v23, 0.0  ;;  %v541_v32 = vmax.f32 %v1759_v24, 0.0  ;;  %v542_v33 = vmax.f32 %v1761_v25, 0.0  ;;  %v543_v34 = vmax.f32 %v1763_v26, 0.0 }
  0x6f   : > { %v544_v35 = vmax.f32 %v1765_v27, 0.0  ;;  %v545_v36 = vmax.f32 %v1767_v28, 0.0  ;;  %v546_v38 = vmax.f32 %v1769_v30, 0.0  ;;  %vm519_vm2 = vcmp.ge.f32.partialorder %v1757_v23, -1.0 }
  0x70   : > { %v547_v39 = vfloor.f32 %v540_v31  ;;  %v548_v40 = vfloor.f32 %v541_v32  ;;  %vm526_vm3 = vcmp.le.f32.partialorder %v1757_v23, 32.0  ;;  %v549_v41 = vfloor.f32 %v542_v33 }
  0x71   : > { %v550_v42 = vfloor.f32 %v543_v34  ;;  %v551_v43 = vfloor.f32 %v544_v35  ;;  %v552_v44 = vfloor.f32 %v545_v36  ;;  %vm520_vm4 = vcmp.ge.f32.partialorder %v1759_v24, -1.0  ;;  %vm1804_vm12 = vmand %vm519_vm2, %vm526_vm3 }
  0x72   : > { %vm527_vm5 = vcmp.le.f32.partialorder %v1759_v24, 32.0  ;;  %v553_v45 = vfloor.f32 %v546_v38  ;;  %v554_v46 = vmin.f32 %v547_v39, 31.0  ;;  %v555_v47 = vmin.f32 %v548_v40, 31.0 }
  0x73   : > { %vm521_vm6 = vcmp.ge.f32.partialorder %v1761_v25, -1.0  ;;  %vm528_vm7 = vcmp.le.f32.partialorder %v1761_v25, 32.0  ;;  %v556_v48 = vmin.f32 %v549_v41, 31.0  ;;  %v557_v49 = vmin.f32 %v550_v42, 31.0  ;;  %vm1816_vm8 = vmand %vm520_vm4, %vm527_vm5 }
  0x74   : > { %v558_v50 = vmin.f32 %v551_v43, 31.0  ;;  %v559_v51 = vmin.f32 %v552_v44, 31.0  ;;  %vm529_vm9 = vcmp.le.f32.partialorder %v1763_v26, 32.0  ;;  %v560_v52 = vmin.f32 %v553_v45, 31.0  ;;  %vm1824_vm2 = vmand %vm521_vm6, %vm528_vm7 }
  0x75   : > { %v561_v53 = vadd.f32 1.0, %v554_v46  ;;  %v562_v54 = vadd.f32 1.0, %v555_v47  ;;  %v1788_v55 = vsub.f32 %v540_v31, %v554_v46  ;;  %v563_v56 = vadd.f32 1.0, %v556_v48 }
  0x76   : > { %v564_v57 = vadd.f32 1.0, %v557_v49  ;;  %v565_v58 = vadd.f32 1.0, %v558_v50  ;;  %v566_v59 = vadd.f32 1.0, %v559_v51  ;;  %v567_v60 = vadd.f32 1.0, %v560_v52 }
  0x77   : > { %v568_v61 = vmin.f32 %v561_v53, 31.0  ;;  %v569_v62 = vmin.f32 %v562_v54, 31.0  ;;  %v576_v63 = vsub.f32 %v541_v32, %v555_v47  ;;  %v570_v0 = vmin.f32 %v563_v56, 31.0 }
  0x78   : > { %v571_v1 = vmin.f32 %v564_v57, 31.0  ;;  %v572_v2 = vmin.f32 %v565_v58, 31.0  ;;  %v573_v3 = vmin.f32 %v566_v59, 31.0  ;;  %v574_v4 = vmin.f32 %v567_v60, 31.0 }
  0x79   : > { %v577_v6 = vsub.f32 %v542_v33, %v556_v48  ;;  %v578_v7 = vsub.f32 %v543_v34, %v557_v49  ;;  %v579_v8 = vsub.f32 %v544_v35, %v558_v50  ;;  %v580_v9 = vsub.f32 %v545_v36, %v559_v51 }
  0x7a   : > { %v581_v10 = vsub.f32 %v546_v38, %v560_v52  ;;  %v582_v11 = vsub.f32 1.0, %v1788_v55  ;;  %v583_v12 = vsub.f32 1.0, %v576_v63  ;;  %vm589_vm0 = vcmp.eq.f32.partialorder %v1777_v37, %v554_v46 }
  0x7b   : > { %v584_v13 = vsub.f32 1.0, %v577_v6  ;;  %v585_v14 = vsub.f32 1.0, %v578_v7  ;;  %v586_v15 = vsub.f32 1.0, %v579_v8  ;;  %v587_v16 = vsub.f32 1.0, %v580_v9 }
  0x7c   : > { %v588_v17 = vsub.f32 1.0, %v581_v10  ;;  %vm590_vm14 = vcmp.eq.f32.partialorder %v1777_v37, %v555_v47  ;;  %vm591_vm15 = vcmp.eq.f32.partialorder %v1777_v37, %v556_v48  ;;  %vm592_vm13 = vcmp.eq.f32.partialorder %v1777_v37, %v557_v49 }
  0x7d   : > { %vm593_vm10 = vcmp.eq.f32.partialorder %v1777_v37, %v558_v50  ;;  %vm594_vm1 = vcmp.eq.f32.partialorder %v1777_v37, %v559_v51  ;;  %vm595_vm11 = vcmp.eq.f32.partialorder %v1777_v37, %v560_v52  ;;  %v596_v20 = vsel %vm589_vm0, %v582_v11, 0.0 }
  0x7e   : > { %v597_v21 = vsel %vm590_vm14, %v583_v12, 0.0  ;;  %v598_v22 = vsel %vm591_vm15, %v584_v13, 0.0  ;;  %v599_v23 = vsel %vm592_vm13, %v585_v14, 0.0  ;;  %v600_v31 = vsel %vm593_vm10, %v586_v15, 0.0 }
  0x7f   : > { %v601_v32 = vsel %vm594_vm1, %v587_v16, 0.0  ;;  %v602_v33 = vsel %vm595_vm11, %v588_v17, 0.0  ;;  %vm1829_vm3 = vcmp.eq.f32.partialorder %v1777_v37, %v568_v61  ;;  %vm2209_vm4 = vcmp.ge.f32.partialorder %v1763_v26, -1.0 }
  0x80   : > { %vm1837_vm5 = vmand %vm2209_vm4, %vm529_vm9  ;;  %vm1842_vm6 = vcmp.eq.f32.partialorder %v1777_v37, %v569_v62  ;;  %vm1847_vm1 = vcmp.eq.f32.partialorder %v1777_v37, %v570_v0  ;;  %vm1852_vm7 = vcmp.eq.f32.partialorder %v1777_v37, %v571_v1  ;;  %vm1857_vm9 = vcmp.eq.f32.partialorder %v1777_v37, %v572_v2 }
  0x81   : > { %vm2220_vm10 = vcmp.le.f32.partialorder %v1765_v27, 32.0  ;;  %vm2221_vm11 = vcmp.ge.f32.partialorder %v1765_v27, -1.0  ;;  %vm1870_vm14 = vcmp.eq.f32.partialorder %v1777_v37, %v573_v3  ;;  %vm1875_vm15 = vcmp.eq.f32.partialorder %v1777_v37, %v574_v4 }
  0x82   : > { %vm1865_vm13 = vmand %vm2221_vm11, %vm2220_vm10  ;;  %v610_v41 = vsel %vm1829_vm3, %v1788_v55, 0.0  ;;  %v611_v27 = vsel %vm1842_vm6, %v576_v63, 0.0  ;;  %vm2228_vm0 = vcmp.le.f32.partialorder %v1767_v28, 32.0  ;;  %vm2229_vm4 = vcmp.ge.f32.partialorder %v1767_v28, -1.0 }
  0x83   : > { %vm1888_vm10 = vmand %vm2229_vm4, %vm2228_vm0  ;;  %v612_v43 = vsel %vm1847_vm1, %v577_v6, 0.0  ;;  %v613_v44 = vsel %vm1852_vm7, %v578_v7, 0.0  ;;  %v614_v45 = vsel %vm1857_vm9, %v579_v8, 0.0  ;;  %v615_v46 = vsel %vm1870_vm14, %v580_v9, 0.0 }
  0x84   : > { %vm2232_vm3 = vcmp.le.f32.partialorder %v1769_v30, 32.0  ;;  %vm2233_vm6 = vcmp.ge.f32.partialorder %v1769_v30, -1.0  ;;  %v616_v47 = vsel %vm1875_vm15, %v581_v10, 0.0  ;;  %v617_v48 = vadd.f32 %v610_v41, %v596_v20 }
  0x85   : > { %vm1904_vm11 = vmand %vm2233_vm6, %vm2232_vm3  ;;  %v618_v49 = vadd.f32 %v611_v27, %v597_v21  ;;  %v619_v50 = vadd.f32 %v612_v43, %v598_v22  ;;  %v620_v51 = vadd.f32 %v613_v44, %v599_v23  ;;  %v621_v52 = vadd.f32 %v614_v45, %v600_v31 }
  0x86   : > { %v622_v53 = vadd.f32 %v615_v46, %v601_v32  ;;  %v623_v54 = vadd.f32 %v616_v47, %v602_v33  ;;  %v624_v55 = vsel %vm1804_vm12, %v617_v48, 0.0  ;;  %vm2236_vm1 = vcmask 254976  }
  0x87   : > { %v625_v30 = vsel %vm1816_vm8, %v618_v49, 0.0  ;;  %v626_v56 = vsel %vm1824_vm2, %v619_v50, 0.0  ;;  %v627_v57 = vsel %vm1837_vm5, %v620_v51, 0.0  ;;  %v628_v58 = vsel %vm1865_vm13, %v621_v52, 0.0  ;;  %vm2237_vm12 = vmmov %vm2236_vm1 }
  0x88   : > { %v629_v59 = vsel %vm1888_vm10, %v622_v53, 0.0  ;;  %v630_v60 = vsel %vm1904_vm11, %v623_v54, 0.0  ;;  %v631_v61 = vsel %vm2236_vm1, %v624_v55, 0.0  ;;  %v638_v62 = vsel %vm2237_vm12, %v625_v30, 0.0  ;;  %vm2238_vm8 = vmmov %vm2236_vm1 }
  0x89   : > { %v645_v63 = vsel %vm2238_vm8, %v626_v56, 0.0  ;;  %vm2239_vm7 = vmmov %vm2236_vm1  ;;  %v632_v1 = vrot.slane %v631_v61, 4  ;;  %v639_v2 = vrot.slane %v638_v62, 4  ;;  %vm710_vm13 = vcmask 1041409  }
  0x8a   : > { %v652_v0 = vsel %vm2239_vm7, %v627_v57, 0.0  ;;  %v646_v3 = vrot.slane %v645_v63, 4  ;;  %vm2240_vm2 = vmmov %vm2236_vm1  ;;  %vm712_vm14 = vcmask 1042434   ;;  %vm714_vm15 = vcmask 1043459  }
  0x8b   : > { %v653_v4 = vrot.slane %v652_v0, 4  ;;  %v659_v6 = vsel %vm2240_vm2, %v628_v58, 0.0  ;;  %vm2241_vm5 = vmmov %vm2236_vm1  ;;  %v633_v9 = vadd.f32 %v632_v1, %v631_v61  ;;  %v640_v10 = vadd.f32 %v639_v2, %v638_v62  ;;  %v688_v61 = vld [vmem:[%s1739_s24 + $0x8] sm:$0xff]  ;;  %v689_v62 = vld [vmem:[%s1739_s24 + $0x10] sm:$0xff] }
  0x8c   : > { %v666_v7 = vsel %vm2241_vm5, %v629_v59, 0.0  ;;  %vm2242_vm9 = vmmov %vm2236_vm1  ;;  %v647_v11 = vadd.f32 %v646_v3, %v645_v63  ;;  %v660_v13 = vrot.slane %v659_v6, 4  ;;  %vm2195_vm0 = vcmask 1044484   ;;  %v690_v63 = vld [vmem:[%s1739_s24 + $0x18] sm:$0xff]  ;;  %v692_v1 = vld [vmem:[%s1739_s24 + $0x28] sm:$0xff] }
  0x8d   : > { %v673_v8 = vsel %vm2242_vm9, %v630_v60, 0.0  ;;  %v654_v12 = vadd.f32 %v653_v4, %v652_v0  ;;  %v667_v14 = vrot.slane %v666_v7, 4  ;;  %v634_v16 = vrot.slane %v633_v9, 2  ;;  %v691_v0 = vld [vmem:[%s1739_s24 + $0x20] sm:$0xff]  ;;  %v693_v2 = vld [vmem:[%s1739_s24 + $0x30] sm:$0xff]  ;;  %v694_v3 = vld [vmem:[%s1739_s24 + $0x38] sm:$0xff] }
  0x8e   : > { %v674_v15 = vrot.slane %v673_v8, 4  ;;  %v641_v17 = vrot.slane %v640_v10, 2  ;;  %v648_v18 = vrot.slane %v647_v11, 2  ;;  %v661_v20 = vadd.f32 %v660_v13, %v659_v6  ;;  %v695_v4 = vld [vmem:[%s1739_s24 + $0x40] sm:$0xff]  ;;  %v696_v6 = vld [vmem:[%s1739_s24 + $0x48] sm:$0xff] }
  0x8f   : > { %v655_v19 = vrot.slane %v654_v12, 2  ;;  %v668_v21 = vadd.f32 %v667_v14, %v666_v7  ;;  %v635_v23 = vadd.f32 %v634_v16, %v633_v9  ;;  %vm2194_vm4 = vcmask 1045509   ;;  %v697_v7 = vld [vmem:[%s1739_s24 + $0x50] sm:$0xff]  ;;  %v699_v9 = vld [vmem:[%s1739_s24 + $0x60] sm:$0xff] }
  0x90   : > { %v675_v22 = vadd.f32 %v674_v15, %v673_v8  ;;  %v642_v29 = vadd.f32 %v641_v17, %v640_v10  ;;  %v649_v31 = vadd.f32 %v648_v18, %v647_v11  ;;  %v662_v33 = vrot.slane %v661_v20, 2  ;;  %v698_v8 = vld [vmem:[%s1739_s24 + $0x58] sm:$0xff]  ;;  %v700_v10 = vld [vmem:[%s1739_s24 + $0x68] sm:$0xff]  ;;  %v701_v11 = vld [vmem:[%s1739_s24 + $0x70] sm:$0xff] }
  0x91   : > { %v656_v32 = vadd.f32 %v655_v19, %v654_v12  ;;  %v669_v24 = vrot.slane %v668_v21, 2  ;;  %v636_v25 = vrot.slane %v635_v23, 1  ;;  %vm2193_vm10 = vcmask 1046534   ;;  %v702_v12 = vld [vmem:[%s1739_s24 + $0x78] sm:$0xff] }
  0x92   : > { %v676_v34 = vrot.slane %v675_v22, 2  ;;  %v643_v35 = vrot.slane %v642_v29, 1  ;;  %v650_v36 = vrot.slane %v649_v31, 1  ;;  %v663_v38 = vadd.f32 %v662_v33, %v661_v20 }
  0x93   : > { %v657_v26 = vrot.slane %v656_v32, 1  ;;  %v670_v39 = vadd.f32 %v669_v24, %v668_v21  ;;  %v637_v41 = vadd.f32 %v636_v25, %v635_v23  ;;  %vm2243_vm3 = vcmask 261120  }
  0x94   : > { %v677_v40 = vadd.f32 %v676_v34, %v675_v22  ;;  %v644_v27 = vadd.f32 %v643_v35, %v642_v29  ;;  %v651_v42 = vadd.f32 %v650_v36, %v649_v31  ;;  %v664_v44 = vrot.slane %v663_v38, 1  ;;  %vm2244_vm6 = vmmov %vm2243_vm3 }
  0x95   : > { %v658_v43 = vadd.f32 %v657_v26, %v656_v32  ;;  %v671_v45 = vrot.slane %v670_v39, 1  ;;  %v680_v28 = vmul.f32 0.5, %v637_v41  ;;  %vm2245_vm11 = vmmov %vm2243_vm3  ;;  %v1637_v13 = vmov 0.0|0.0  }
  0x96   : > { %v678_v46 = vrot.slane %v677_v40, 1  ;;  %v681_v47 = vmul.f32 0.5, %v644_v27  ;;  %v682_v48 = vmul.f32 0.5, %v651_v42  ;;  %v665_v50 = vadd.f32 %v664_v44, %v663_v38  ;;  %vm2246_vm1 = vmmov %vm2243_vm3  ;;  %1481 = vmatprep.subr.bf16.mxu1 %v1637_v13 }
  0x97   : > { %v683_v49 = vmul.f32 0.5, %v658_v43  ;;  %v672_v51 = vadd.f32 %v671_v45, %v670_v39  ;;  %vm2247_vm12 = vmmov %vm2246_vm1  ;;  %v1639_v14 = vmov 0.0   ;;  %v298_v15 = vstv %s284_s18 }
  0x98   : > { %v679_v52 = vadd.f32 %v678_v46, %v677_v40  ;;  %v711_v53 = vsel %vm710_vm13, %v681_v47, %v680_v28  ;;  %v684_v54 = vmul.f32 0.5, %v665_v50  ;;  %vm2248_vm8 = vmmov %vm2246_vm1  ;;  %v299_v16 = vmul.f32 0.0, %v298_v15 }
  0x99   : > { %v685_v55 = vmul.f32 0.5, %v672_v51  ;;  %v713_v56 = vsel %vm712_vm14, %v682_v48, %v711_v53  ;;  %vm2249_vm7 = vmmov %vm2246_vm1  ;;  %v315_v17 = vmul.f32 %v1754_v5, %v298_v15  ;;  %v306_v18 = vstv %s268_s13 }
  0x9a   : > { %v686_v30 = vmul.f32 0.5, %v679_v52  ;;  %v715_v57 = vsel %vm714_vm15, %v683_v49, %v713_v56  ;;  %vm2250_vm2 = vmmov %vm2246_vm1  ;;  %v301_v19 = vmul.f32 2.0, %v298_v15  ;;  %v307_v20 = vadd.f32 %v306_v18, %v299_v16 }
  0x9b   : > { %v717_v58 = vsel %vm2195_vm0, %v684_v54, %v715_v57  ;;  %vm2251_vm5 = vmmov %vm2246_vm1  ;;  %v308_v21 = vadd.f32 %v306_v18, %v298_v15  ;;  %v317_v22 = vmul.f32 0.5, %v315_v17  ;;  %v302_v23 = vmul.f32 3.0, %v298_v15 }
  0x9c   : > { %v719_v59 = vsel %vm2194_vm4, %v685_v55, %v717_v58  ;;  %vm2252_vm9 = vmmov %vm2246_vm1  ;;  %v309_v29 = vadd.f32 %v306_v18, %v301_v19  ;;  %v303_v33 = vmul.f32 4.0, %v298_v15  ;;  %v304_v34 = vmul.f32 5.0, %v298_v15 }
  0x9d   : > { %v721_v60 = vsel %vm2193_vm10, %v686_v30, %v719_v59  ;;  %v1976_v31 = vadd.f32 %v317_v22, %v307_v20  ;;  %v1978_v32 = vadd.f32 %v317_v22, %v308_v21  ;;  %v310_v24 = vadd.f32 %v306_v18, %v302_v23 }
  0x9e   : > { %1411 = vmatprep.subr.msk.mxu0 %vm2243_vm3, %v721_v60  ;;  %vm2253_vm3 = vmmov %vm2246_vm1  ;;  %v1980_v25 = vadd.f32 %v317_v22, %v309_v29  ;;  %v305_v35 = vmul.f32 6.0, %v298_v15  ;;  %v311_v26 = vadd.f32 %v306_v18, %v303_v33  ;;  %v312_v39 = vadd.f32 %v306_v18, %v304_v34 }
  0x9f   : > { %1412 = vmatpush3.xpose.msk.msra.mxu0 %vm2244_vm6, %v721_v60  ;;  %vm2254_vm6 = vmmov %vm2246_vm1  ;;  %v346_v36 = vmax.f32 %v1976_v31, 0.0  ;;  %v347_v5 = vmax.f32 %v1978_v32, 0.0  ;;  %v1984_v38 = vadd.f32 %v317_v22, %v310_v24 }
  0xa0   : > { %v348_v40 = vmax.f32 %v1980_v25, 0.0  ;;  %v313_v41 = vadd.f32 %v306_v18, %v305_v35  ;;  %v1987_v43 = vadd.f32 %v317_v22, %v311_v26  ;;  %v1990_v45 = vadd.f32 %v317_v22, %v312_v39 }
  0xa1   : > { %v353_v27 = vfloor.f32 %v346_v36  ;;  %v354_v42 = vfloor.f32 %v347_v5  ;;  %v349_v44 = vmax.f32 %v1984_v38, 0.0 }
  0xa2   : > { %1414 = vmatmul.mubr.msk.f32.vlgmr.msra.gmra.mrb[0].mxu0 %vm2245_vm11, %v688_v61  ;;  %vm2255_vm11 = vmmov %vm2246_vm1  ;;  %v355_v46 = vfloor.f32 %v348_v40  ;;  %v1992_v28 = vadd.f32 %v317_v22, %v313_v41  ;;  %v350_v49 = vmax.f32 %v1987_v43, 0.0  ;;  %v351_v51 = vmax.f32 %v1990_v45, 0.0 }
  0xa3   : > { %1416 = vmatprep.mubr.msk.f32.mxu0 %vm2246_vm1, %v689_v62  ;;  %v360_v47 = vmin.f32 %v353_v27, 31.0  ;;  %v361_v48 = vmin.f32 %v354_v42, 31.0  ;;  %v356_v50 = vfloor.f32 %v349_v44  ;;  %vm330_vm4 = vcmp.ge.f32.partialorder %v1990_v45, -1.0 }
  0xa4   : > { %v362_v52 = vmin.f32 %v355_v46, 31.0  ;;  %v352_v53 = vmax.f32 %v1992_v28, 0.0  ;;  %v357_v30 = vfloor.f32 %v350_v49  ;;  %v358_v58 = vfloor.f32 %v351_v51 }
  0xa5   : > { %v367_v54 = vadd.f32 1.0, %v360_v47  ;;  %v368_v55 = vadd.f32 1.0, %v361_v48  ;;  %v363_v56 = vmin.f32 %v356_v50, 31.0  ;;  %v381_v57 = vsub.f32 %v346_v36, %v360_v47 }
  0xa6   : > { %1417 = vmatmul.mubr.msk.f32.gmra.mrb[2].mxu0 %vm2247_vm12, %v690_v63  ;;  %vm2256_vm12 = vmmov %vm2246_vm1  ;;  %v369_v59 = vadd.f32 1.0, %v362_v52  ;;  %v382_v60 = vsub.f32 %v347_v5, %v361_v48  ;;  %v359_v61 = vfloor.f32 %v352_v53 }
  0xa7   : > { %1419 = vmatprep.mubr.msk.f32.mxu0 %vm2248_vm8, %v691_v0  ;;  %vm2257_vm8 = vmmov %vm2246_vm1  ;;  %v374_v62 = vmin.f32 %v367_v54, 31.0  ;;  %v375_v63 = vmin.f32 %v368_v55, 31.0  ;;  %v364_v0 = vmin.f32 %v357_v30, 31.0  ;;  %v384_v15 = vsub.f32 %v349_v44, %v363_v56 }
  0xa9   : > { %v385_v23 = vsub.f32 %v350_v49, %v364_v0  ;;  %v391_v33 = vsub.f32 1.0, %v384_v15 }
  0xaa   : > { %1420 = vmatmul.mubr.msk.f32.gmra.mrb[4].mxu0 %vm2249_vm7, %v692_v1  ;;  %vm2258_vm7 = vmmov %vm2246_vm1  ;;  %v370_v1 = vadd.f32 1.0, %v363_v56 }
  0xab   : > { %1422 = vmatprep.mubr.msk.f32.mxu0 %vm2250_vm2, %v693_v2  ;;  %vm2191_vm2 = vmmov 0   ;;  %v383_v2 = vsub.f32 %v348_v40, %v362_v52  ;;  %v392_v27 = vsub.f32 1.0, %v385_v23 }
  0xac   : > { %1445 = vmatprep.mubr.msk.f32.mxu1 %vm2191_vm2, %v1639_v14  ;;  %vm333_vm2 = vcmp.le.f32.partialorder %v1978_v32, 32.0 }
  0xad   : > { %v390_v16 = vsub.f32 1.0, %v383_v2 }
  0xae   : > { %1423 = vmatmul.mubr.msk.f32.gmra.mrb[6].mxu0 %vm2251_vm5, %v694_v3  ;;  %v388_v3 = vsub.f32 1.0, %v381_v57  ;;  %vm395_vm5 = vcmp.eq.f32.partialorder %v1777_v37, %v360_v47 }
  0xaf   : > { %1425 = vmatprep.mubr.msk.f32.mxu0 %vm2252_vm9, %v695_v4  ;;  %v1999_v4 = vmin.f32 %v358_v58, 31.0  ;;  %vm396_vm9 = vcmp.eq.f32.partialorder %v1777_v37, %v361_v48 }
  0xb0   : > { %v402_v17 = vsel %vm395_vm5, %v388_v3, 0.0  ;;  %vm398_vm5 = vcmp.eq.f32.partialorder %v1777_v37, %v363_v56 }
  0xb1   : > { %v372_v22 = vadd.f32 1.0, %v1999_v4  ;;  %v386_v40 = vsub.f32 %v351_v51, %v1999_v4  ;;  %v405_v42 = vsel %vm398_vm5, %v391_v33, 0.0  ;;  %vm329_vm5 = vcmp.ge.f32.partialorder %v1987_v43, -1.0 }
  0xb2   : > { %1426 = vmatmul.mubr.msk.f32.gmra.mrb[8].mxu0 %vm2253_vm3, %v696_v6  ;;  %v376_v6 = vmin.f32 %v369_v59, 31.0  ;;  %vm2006_vm3 = vcmp.eq.f32.partialorder %v1777_v37, %v374_v62 }
  0xb3   : > { %1428 = vmatprep.mubr.msk.f32.mxu0 %vm2254_vm6, %v697_v7  ;;  %v389_v7 = vsub.f32 1.0, %v382_v60  ;;  %vm2011_vm6 = vcmp.eq.f32.partialorder %v1777_v37, %v375_v63  ;;  %v416_v20 = vsel %vm2006_vm3, %v381_v57, 0.0  ;;  %v379_v41 = vmin.f32 %v372_v22, 31.0 }
  0xb4   : > { %v417_v21 = vsel %vm2011_vm6, %v382_v60, 0.0  ;;  %v423_v5 = vadd.f32 %v416_v20, %v402_v17  ;;  %vm327_vm6 = vcmp.ge.f32.partialorder %v1980_v25, -1.0  ;;  %v393_v51 = vsub.f32 1.0, %v386_v40 }
  0xb5   : > { %v403_v18 = vsel %vm396_vm9, %v389_v7, 0.0 }
  0xb6   : > { %1429 = vmatmul.mubr.msk.f32.gmra.mrb[10].mxu0 %vm2255_vm11, %v698_v8  ;;  %v2002_v8 = vmin.f32 %v359_v61, 31.0  ;;  %vm325_vm11 = vcmp.ge.f32.partialorder %v1976_v31, -1.0  ;;  %v424_v26 = vadd.f32 %v417_v21, %v403_v18 }
  0xb7   : > { %1431 = vmatprep.mubr.msk.f32.mxu0 %vm2246_vm1, %v699_v9  ;;  %vm332_vm1 = vcmp.le.f32.partialorder %v1976_v31, 32.0 }
  0xb8   : > { %vm2035_vm9 = vmand %vm325_vm11, %vm332_vm1  ;;  %v373_v39 = vadd.f32 1.0, %v2002_v8  ;;  %vm328_vm1 = vcmp.ge.f32.partialorder %v1984_v38, -1.0  ;;  %v387_v47 = vsub.f32 %v352_v53, %v2002_v8  ;;  %vm401_vm0 = vcmp.eq.f32.partialorder %v1777_v37, %v2002_v8 }
  0xb9   : > { %v430_v48 = vsel %vm2035_vm9, %v423_v5, 0.0  ;;  %vm336_vm9 = vcmp.le.f32.partialorder %v1987_v43, 32.0 }
  0xba   : > { %1432 = vmatmul.mubr.msk.f32.gmra.mrb[12].mxu0 %vm2256_vm12, %v700_v10  ;;  %vm397_vm12 = vcmp.eq.f32.partialorder %v1777_v37, %v362_v52  ;;  %v380_v50 = vmin.f32 %v373_v39, 31.0  ;;  %v394_v59 = vsub.f32 1.0, %v387_v47 }
  0xbb   : > { %1434 = vmatprep.mubr.msk.f32.mxu0 %vm2257_vm8, %v701_v11  ;;  %v371_v11 = vadd.f32 1.0, %v364_v0  ;;  %vm2019_vm8 = vcmp.eq.f32.partialorder %v1777_v37, %v376_v6  ;;  %v404_v24 = vsel %vm397_vm12, %v390_v16, 0.0  ;;  %vm334_vm12 = vcmp.le.f32.partialorder %v1980_v25, 32.0 }
  0xbc   : > { %v418_v36 = vsel %vm2019_vm8, %v383_v2, 0.0  ;;  %vm399_vm8 = vcmp.eq.f32.partialorder %v1777_v37, %v364_v0  ;;  %v408_v3 = vsel %vm401_vm0, %v394_v59, 0.0 }
  0xbd   : > { %v378_v29 = vmin.f32 %v371_v11, 31.0  ;;  %v425_v44 = vadd.f32 %v418_v36, %v404_v24  ;;  %v406_v52 = vsel %vm399_vm8, %v392_v27, 0.0 }
  0xbe   : > { %1435 = vmatmul.mubr.msk.f32.gmra.mrb[14].mxu0 %vm2258_vm7, %v702_v12  ;;  %v377_v12 = vmin.f32 %v370_v1, 31.0  ;;  %vm326_vm7 = vcmp.ge.f32.partialorder %v1978_v32, -1.0 }
  0xbf   : > { %vm2050_vm11 = vmand %vm326_vm7, %vm333_vm2  ;;  %vm2061_vm10 = vcmp.eq.f32.partialorder %v1777_v37, %v378_v29  ;;  %vm335_vm2 = vcmp.le.f32.partialorder %v1984_v38, 32.0 }
  0xc0   : > { %vm2040_vm3 = vcmp.eq.f32.partialorder %v1777_v37, %v377_v12  ;;  %vm2068_vm7 = vmand %vm327_vm6, %vm334_vm12  ;;  %v431_v49 = vsel %vm2050_vm11, %v424_v26, 0.0  ;;  %vm2083_vm6 = vcmp.eq.f32.partialorder %v1777_v37, %v379_v41  ;;  %v420_v53 = vsel %vm2061_vm10, %v385_v23, 0.0 }
  0xc1   : > { %v419_v25 = vsel %vm2040_vm3, %v384_v15, 0.0  ;;  %vm400_vm3 = vcmp.eq.f32.partialorder %v1777_v37, %v1999_v4  ;;  %vm2092_vm12 = vmand %vm328_vm1, %vm335_vm2  ;;  %v432_v56 = vsel %vm2068_vm7, %v425_v44, 0.0  ;;  %vm2279_vm11 = vcmask 254976  }
  0xc2   : > { %v426_v55 = vadd.f32 %v419_v25, %v405_v42  ;;  %v438_v57 = vsel %vm2279_vm11, %v430_v48, 0.0  ;;  %vm2280_vm8 = vmmov %vm2279_vm11  ;;  %vm337_vm10 = vcmp.le.f32.partialorder %v1990_v45, 32.0  ;;  %v407_v38 = vsel %vm400_vm3, %v393_v51, 0.0 }
  0xc3   : > { %v445_v58 = vsel %vm2280_vm8, %v431_v49, 0.0  ;;  %vm2105_vm1 = vcmp.eq.f32.partialorder %v1777_v37, %v380_v50  ;;  %v421_v61 = vsel %vm2083_vm6, %v386_v40, 0.0  ;;  %v427_v62 = vadd.f32 %v420_v53, %v406_v52  ;;  %vm2113_vm2 = vmand %vm329_vm5, %vm336_vm9 }
  0xc4   : > { %v433_v0 = vsel %vm2092_vm12, %v426_v55, 0.0  ;;  %v439_v1 = vrot.slane %v438_v57, 4  ;;  %v446_v2 = vrot.slane %v445_v58, 4  ;;  %vm2285_vm7 = vmmov %vm2280_vm8  ;;  %vm331_vm3 = vcmp.ge.f32.partialorder %v1992_v28, -1.0 }
  0xc5   : > { %v452_v37 = vsel %vm2285_vm7, %v432_v56, 0.0  ;;  %v422_v4 = vsel %vm2105_vm1, %v387_v47, 0.0  ;;  %v428_v6 = vadd.f32 %v421_v61, %v407_v38  ;;  %vm338_vm6 = vcmp.le.f32.partialorder %v1992_v28, 32.0  ;;  %vm2128_vm5 = vmand %vm330_vm4, %vm337_vm10 }
  0xc6   : > { %v434_v7 = vsel %vm2113_vm2, %v427_v62, 0.0  ;;  %v453_v8 = vrot.slane %v452_v37, 4  ;;  %vm2288_vm9 = vmmov %vm2285_vm7  ;;  %v440_v10 = vadd.f32 %v439_v1, %v438_v57  ;;  %v447_v11 = vadd.f32 %v446_v2, %v445_v58 }
  0xc7   : > { %v459_v9 = vsel %vm2288_vm9, %v433_v0, 0.0  ;;  %v429_v12 = vadd.f32 %v422_v4, %v408_v3  ;;  %vm2135_vm0 = vmand %vm331_vm3, %vm338_vm6  ;;  %v435_v45 = vsel %vm2128_vm5, %v428_v6, 0.0  ;;  %vm2294_vm8 = vcmask 1044484  }
  0xc8   : > { %v460_v28 = vrot.slane %v459_v9, 4  ;;  %vm2291_vm4 = vmmov %vm2285_vm7  ;;  %v454_v17 = vadd.f32 %v453_v8, %v452_v37  ;;  %v441_v18 = vrot.slane %v440_v10, 2  ;;  %v448_v19 = vrot.slane %v447_v11, 2 }
  0xc9   : > { %v466_v16 = vsel %vm2291_vm4, %v434_v7, 0.0  ;;  %v436_v20 = vsel %vm2135_vm0, %v429_v12, 0.0  ;;  %vm2292_vm12 = vmmov %vm2291_vm4  ;;  %vm2298_vm10 = vmmov 0   ;;  %vm1213_vm3 = vcmask 55296  }
  0xca   : > { %v467_v21 = vrot.slane %v466_v16, 4  ;;  %v473_v22 = vsel %vm2292_vm12, %v435_v45, 0.0  ;;  %v461_v23 = vadd.f32 %v460_v28, %v459_v9  ;;  %v455_v29 = vrot.slane %v454_v17, 2  ;;  %vm2293_vm11 = vmmov %vm2291_vm4 }
  0xcb   : > { %v442_v33 = vadd.f32 %v441_v18, %v440_v10  ;;  %v449_v24 = vadd.f32 %v448_v19, %v447_v11  ;;  %v474_v34 = vrot.slane %v473_v22, 4  ;;  %v480_v35 = vsel %vm2293_vm11, %v436_v20, 0.0 }
  0xcc   : > { %v468_v36 = vadd.f32 %v467_v21, %v466_v16  ;;  %v462_v5 = vrot.slane %v461_v23, 2  ;;  %v456_v26 = vadd.f32 %v455_v29, %v454_v17  ;;  %v481_v31 = vrot.slane %v480_v35, 4 }
  0xcd   : > { %v443_v39 = vrot.slane %v442_v33, 1  ;;  %v450_v40 = vrot.slane %v449_v24, 1  ;;  %v475_v41 = vadd.f32 %v474_v34, %v473_v22 }
  0xce   : > { %v469_v27 = vrot.slane %v468_v36, 2  ;;  %v463_v42 = vadd.f32 %v462_v5, %v461_v23  ;;  %v457_v32 = vrot.slane %v456_v26, 1  ;;  %v482_v25 = vadd.f32 %v481_v31, %v480_v35 }
  0xcf   : > { %v444_v44 = vadd.f32 %v443_v39, %v442_v33  ;;  %v451_v46 = vadd.f32 %v450_v40, %v449_v24  ;;  %v476_v47 = vrot.slane %v475_v41, 2 }
  0xd0   : > { %v470_v48 = vadd.f32 %v469_v27, %v468_v36  ;;  %v464_v49 = vrot.slane %v463_v42, 1  ;;  %v458_v50 = vadd.f32 %v457_v32, %v456_v26  ;;  %v483_v51 = vrot.slane %v482_v25, 2 }
  0xd1   : > { %v477_v52 = vadd.f32 %v476_v47, %v475_v41  ;;  %v487_v54 = vmul.f32 0.5, %v444_v44  ;;  %v488_v53 = vmul.f32 0.5, %v451_v46 }
  0xd2   : > { %v471_v55 = vrot.slane %v470_v48, 1  ;;  %v465_v30 = vadd.f32 %v464_v49, %v463_v42  ;;  %v484_v56 = vadd.f32 %v483_v51, %v482_v25  ;;  %v489_v57 = vmul.f32 0.5, %v458_v50 }
  0xd3   : > { %v478_v58 = vrot.slane %v477_v52, 1  ;;  %v925_v59 = vsel %vm710_vm13, %v488_v53, %v487_v54  ;;  %vm2295_vm13 = vcmask 1045509  }
  0xd4   : > { %v472_v38 = vadd.f32 %v471_v55, %v470_v48  ;;  %v490_v60 = vmul.f32 0.5, %v465_v30  ;;  %v485_v61 = vrot.slane %v484_v56, 1  ;;  %v926_v62 = vsel %vm712_vm14, %v489_v57, %v925_v59 }
  0xd5   : > { %v479_v63 = vadd.f32 %v478_v58, %v477_v52  ;;  %vm2296_vm14 = vcmask 1046534  }
  0xd6   : > { %v491_v0 = vmul.f32 0.5, %v472_v38  ;;  %v927_v1 = vsel %vm714_vm15, %v490_v60, %v926_v62  ;;  %v486_v37 = vadd.f32 %v485_v61, %v484_v56  ;;  %vm2297_vm15 = vcmask 261120  }
  0xd7   : > { %v492_v4 = vmul.f32 0.5, %v479_v63  ;;  %vm2299_vm1 = vmmov %vm2297_vm15 }
  0xd8   : > { %v928_v43 = vsel %vm2294_vm8, %v491_v0, %v927_v1  ;;  %v493_v8 = vmul.f32 0.5, %v486_v37  ;;  %vm2300_vm2 = vmmov %vm2299_vm1 }
  0xd9   : > { %v929_v10 = vsel %vm2295_vm13, %v492_v4, %v928_v43  ;;  %vm2301_vm7 = vmmov %vm2299_vm1 }
  0xda   : > { %v930_v15 = vsel %vm2296_vm14, %v493_v8, %v929_v10 }
 0x175   : > { %v1415_v2 = vpop.f32.mrb[0].mxu0 }
 0x176   : > { %v839_v3 = vpop.f32.mrb[1].mxu0 }
 0x177   : > { %v1482_v6 = vpack.c.bf16 %v1415_v2, %v839_v3 }
 0x179   : > { %v1418_v7 = vpop.f32.mrb[2].mxu0  ;;  %1483 = vmatpush3.bf16.msra.mxu1 %v1482_v6 }
 0x17a   : > { %v849_v9 = vpop.f32.mrb[3].mxu0  ;;  %1484 = vmatprep.subr.bf16.mxu1 %v1637_v13 }
 0x17b   : > { %v1485_v11 = vpack.c.bf16 %v1418_v7, %v849_v9 }
 0x17d   : > { %v1421_v12 = vpop.f32.mrb[4].mxu0  ;;  %1486 = vmatpush3.bf16.msra.mxu1 %v1485_v11 }
 0x17e   : > { %v859_v45 = vpop.f32.mrb[5].mxu0  ;;  %1487 = vmatprep.subr.bf16.mxu1 %v1637_v13 }
 0x17f   : > { %v1488_v28 = vpack.c.bf16 %v1421_v12, %v859_v45 }
 0x180   : > { %1446 = vmatmul.mubr.msk.f32.vlgmr.msra.gmra.mrb[0].mxu1 %vm2297_vm15, %v930_v15 }
 0x181   : > { %v1424_v16 = vpop.f32.mrb[6].mxu0  ;;  %1489 = vmatpush3.bf16.msra.mxu1 %v1488_v28  ;;  %1456 = vmatprep.mubr.msk.f32.mxu1 %vm2298_vm10, %v1639_v14 }
 0x182   : > { %v869_v17 = vpop.f32.mrb[7].mxu0  ;;  %1490 = vmatprep.subr.bf16.mxu1 %v1637_v13 }
 0x183   : > { %v1491_v18 = vpack.c.bf16 %v1424_v16, %v869_v17 }
 0x185   : > { %v1427_v19 = vpop.f32.mrb[8].mxu0  ;;  %1492 = vmatpush3.bf16.msra.mxu1 %v1491_v18 }
 0x186   : > { %v879_v20 = vpop.f32.mrb[9].mxu0  ;;  %1493 = vmatprep.subr.bf16.mxu1 %v1637_v13 }
 0x187   : > { %v1494_v21 = vpack.c.bf16 %v1427_v19, %v879_v20 }
 0x188   : > { %1457 = vmatmul.mubr.msk.f32.vlgmr.msra.gmra.mrb[2].mxu1 %vm2299_vm1, %v930_v15 }
 0x189   : > { %v1430_v22 = vpop.f32.mrb[10].mxu0  ;;  %1495 = vmatpush3.bf16.msra.mxu1 %v1494_v21  ;;  %1467 = vmatprep.mubr.msk.f32.mxu1 %vm2298_vm10, %v1639_v14 }
 0x18a   : > { %v889_v23 = vpop.f32.mrb[11].mxu0  ;;  %1496 = vmatprep.subr.bf16.mxu1 %v1637_v13 }
 0x18b   : > { %v1497_v29 = vpack.c.bf16 %v1430_v22, %v889_v23 }
 0x18d   : > { %v1433_v33 = vpop.f32.mrb[12].mxu0  ;;  %1498 = vmatpush3.bf16.msra.mxu1 %v1497_v29 }
 0x18e   : > { %v899_v24 = vpop.f32.mrb[13].mxu0  ;;  %1499 = vmatprep.subr.bf16.mxu1 %v1637_v13 }
 0x18f   : > { %v1500_v34 = vpack.c.bf16 %v1433_v33, %v899_v24 }
 0x190   : > { %1468 = vmatmul.mubr.msk.f32.vlgmr.msra.gmra.mrb[4].mxu1 %vm2300_vm2, %v930_v15 }
 0x191   : > { %v1436_v35 = vpop.f32.mrb[14].mxu0  ;;  %1501 = vmatpush3.bf16.msra.mxu1 %v1500_v34  ;;  %1478 = vmatprep.mubr.msk.f32.mxu1 %vm2298_vm10, %v1639_v14 }
 0x192   : > { %v909_v36 = vpop.f32.mrb[15].mxu0  ;;  %1502 = vmatprep.subr.bf16.mxu1 %v1637_v13 }
 0x193   : > { %v1503_v5 = vpack.c.bf16 %v1436_v35, %v909_v36 }
 0x195   : > { %1504 = vmatpush3.bf16.msra.mxu1 %v1503_v5 }
 0x198   : > { %1479 = vmatmul.mubr.msk.f32.vlgmr.msra.gmra.mrb[6].mxu1 %vm2301_vm7, %v930_v15 }
 0x253   : > { %v999_v26 = vpop.f32.mrb[0].mxu1 }
 0x254   : > { %1214 = vst.msk [vmem:[%s1734_s17] sm:$0x7f] %vm1213_vm3, %v999_v26  ;;  %v1447_v31 = vpop.f32.mrb[1].mxu1 }
 0x25b   : > { %v1069_v39 = vpop.f32.mrb[2].mxu1 }
 0x25c   : > { %1215 = vst.msk [vmem:[%s1734_s17 + $0x8] sm:$0x7f] %vm1213_vm3, %v1069_v39  ;;  %v1458_v40 = vpop.f32.mrb[3].mxu1 }
 0x263   : > { %v1139_v41 = vpop.f32.mrb[4].mxu1 }
 0x264   : > { %1216 = vst.msk [vmem:[%s1734_s17 + $0x10] sm:$0x7f] %vm1213_vm3, %v1139_v41  ;;  %v1469_v27 = vpop.f32.mrb[5].mxu1 }
 0x26b   : > { %v1209_v42 = vpop.f32.mrb[6].mxu1 }
 0x26c   : > { %1217 = vst.msk [vmem:[%s1734_s17 + $0x18] sm:$0x7f] %vm1213_vm3, %v1209_v42  ;;  %v1480_v14 = vpop.f32.mrb[7].mxu1 }
 0x26d PF: > { %s22_s0 = sadd.s32 1, %s1630_s0   ;;  %s2302_s20 = smov %s1626_s21 }
 0x26e   : > { %p19_p3 = scmp.ge.s32.totalorder %s22_s0, 10   ;;  %s2303_s21 = smov %s2305_s23 }
 0x270   :  { %21 = sbr.rel (!%p19_p3) target bundleno = 18 (0x12), region = 79 }
 0x277   :  { %1247 = vsyncpa [#allocation5], 1 }
 0x278   :  { %1249 = vsyncpa [#allocation5 + $0x1], 1 }
 0x279   :  { %1250 = vsyncpa [#allocation7], 1 }

</bundles_post_ra>
